<compile_context>
chip_gen: v5e
topology: v5e:2x2
jax: 0.10.0
libtpu: 0.0.40
codegen_flags: <defaults>
</compile_context>

<pallas_src>
import jax
import jax.numpy as jnp
from jax.experimental import pallas as pl
from jax.experimental.pallas import tpu as pltpu


# ----------------------------- Pallas kernel ------------------------------- #
def _make_deepcross_kernel(C, H1, H2):
    """Returns the kernel body with static layer sizes closed over."""

    def kernel(x_ref, cst_d_ref, cst_h_ref, w1_ref, w2_ref, out_ref):
        # x_ref    : [D, TB]       transposed dnn_input tile (batch on lanes), f32
        # cst_d_ref: [D, 2C+1]     cross_w (cols 0..C-1) | cross_b (C..2C-1) | wc (2C)
        # cst_h_ref: [H1+2*H2, 1]  b1 ; b2 ; wd   (sublane-packed)
        # w1_ref   : [H1, D]       DNN layer-1 weight, pre-transposed, bf16
        # w2_ref   : [H2, H1]      DNN layer-2 weight, pre-transposed, bf16
        # out_ref  : [1, TB]       sigmoid(logit), lane-dense row
        x0 = x_ref[...]                                     # [D, TB] f32
        cst_d = cst_d_ref[...]                              # [D, 2C+1] f32
        cst_h = cst_h_ref[...]                              # [H1+2H2, 1] f32

        # --- CrossNet, 'vector' parameterization: pure VPU/XLU, f32, no MXU ---
        xl = x0
        for l in range(C):                                  # cross_num is small & static
            w = cst_d[:, l:l + 1]                           # [D, 1]
            b = cst_d[:, C + l:C + l + 1]                   # [D, 1]
            xl_w = jnp.sum(xl * w, axis=0, keepdims=True)   # [1, TB] per-row scalar
            xl = x0 * xl_w + b + xl
        wc = cst_d[:, 2 * C:2 * C + 1]                      # [D, 1]

        b1 = cst_h[0:H1]                                    # [H1, 1]
        b2 = cst_h[H1:H1 + H2]                              # [H2, 1]
        wd = cst_h[H1 + H2:H1 + 2 * H2]                     # [H2, 1]

        # --- DNN tower: MXU matmuls fed in bf16, f32 accumulation ---
        x0_bf = x0.astype(jnp.bfloat16)
        h1 = jnp.dot(w1_ref[...], x0_bf,
                     preferred_element_type=jnp.float32) + b1
        h1 = jnp.maximum(h1, 0.0)                           # [H1, TB] f32
        h2 = jnp.dot(w2_ref[...], h1.astype(jnp.bfloat16),
                     preferred_element_type=jnp.float32) + b2
        h2 = jnp.maximum(h2, 0.0)                           # [H2, TB] f32

        # --- dnn_linear over cat([cross_out, dnn_out]), out_dim=1:
        #     VPU multiply + sublane reduce (N=1 MXU matmul would be pure latency)
        logit = (jnp.sum(xl * wc, axis=0, keepdims=True)
                 + jnp.sum(h2 * wd, axis=0, keepdims=True))  # [1, TB] f32

        # PredictionLayer (binary sigmoid): exp + reciprocal both on the EUP.
        out_ref[...] = pl.reciprocal(1.0 + jnp.exp(-logit), approx=True)

    return kernel


def _pick_tb(B):
    """Batch tile: multiple of 128, <= 512, keeps >= 2 grid steps when B allows
    (so v7x's two TensorCores both get work via the parallel grid axis)."""
    n128 = pl.cdiv(B, 128)
    if n128 <= 1:
        return 128
    return max(128, min(512, (n128 // 2) * 128))


def deepcross_pallas(dnn_input_t, params, *, tb=None):
    """dnn_input_t: [D, B] f32 (transposed combined_dnn_input) -> [B, 1] f32."""
    D, B = dnn_input_t.shape
    H1 = params["w1"].shape[1]
    H2 = params["w2"].shape[1]
    C = params["cross_w"].shape[1]

    if tb is None:
        tb = _pick_tb(B)
    n_tiles = pl.cdiv(B, tb)
    Bp = n_tiles * tb
    x_t = dnn_input_t.astype(jnp.float32)
    if Bp != B:
        x_t = jnp.pad(x_t, ((0, 0), (0, Bp - B)))           # pad batch (lane) axis only

    # MXU-fed weights in bf16 (halves resident weight VMEM & one-time DMA).
    w1_t = params["w1"].T.astype(jnp.bfloat16)               # [H1, D]
    w2_t = params["w2"].T.astype(jnp.bfloat16)               # [H2, H1]

    # Packed f32 constants (stay VMEM-resident via (0,0) index_maps).
    cst_d = jnp.concatenate(
        [params["cross_w"], params["cross_b"], params["w_final"][:D].reshape(D, 1)],
        axis=1).astype(jnp.float32)                           # [D, 2C+1]
    cst_h = jnp.concatenate(
        [params["b1"].reshape(H1, 1), params["b2"].reshape(H2, 1),
         params["w_final"][D:].reshape(H2, 1)],
        axis=0).astype(jnp.float32)                           # [H1+2*H2, 1]

    kernel = _make_deepcross_kernel(C, H1, H2)

    out = pl.pallas_call(
        kernel,
        out_shape=jax.ShapeDtypeStruct((1, Bp), jnp.float32),
        grid=(n_tiles,),
        in_specs=[
            pl.BlockSpec((D, tb), lambda i: (0, i)),          # activations: batch-tiled
            pl.BlockSpec((D, 2 * C + 1), lambda i: (0, 0)),   # packed cross params + wc
            pl.BlockSpec((H1 + 2 * H2, 1), lambda i: (0, 0)),  # packed b1/b2/wd
            pl.BlockSpec((H1, D), lambda i: (0, 0)),          # bf16 DNN weights, VMEM-resident
            pl.BlockSpec((H2, H1), lambda i: (0, 0)),
        ],
        out_specs=pl.BlockSpec((1, tb), lambda i: (0, i)),
        compiler_params=pltpu.CompilerParams(
            dimension_semantics=("parallel",)),               # v7x: split batch over 2 TCs
    )(x_t, cst_d, cst_h, w1_t, w2_t)

    return out.reshape(Bp, 1)[:B]


# ------------------------------ JAX glue ----------------------------------- #
def build_dnn_input_t(sparse_ids, varlen_ids, sparse_tables, varlen_tables, dense_vals):
    """Embedding lookups + varlen sum pooling + concat, emitted already TRANSPOSED
    as [D, B] (features on sublanes, batch on lanes) so the kernel wrapper does
    not need a separate XLA transpose pass."""
    parts = []
    for f, tbl in enumerate(sparse_tables):
        parts.append(tbl[sparse_ids[:, f]].T)                 # [E, B]
    for f, tbl in enumerate(varlen_tables):
        ids = varlen_ids[:, f, :]                             # [B, L]
        e = tbl[ids]                                          # [B, L, E]
        mask = (ids > 0).astype(e.dtype)[..., None]           # [B, L, 1]
        parts.append(jnp.sum(e * mask, axis=1).T)             # [E, B]
    parts.append(dense_vals.astype(jnp.float32).T)            # [dense_len, B]
    return jnp.concatenate(parts, axis=0)                     # [D, B]


def deepcross_reference(dnn_input, params):
    """Pure-JAX f32 reference matching the PyTorch forward (input is [B, D])."""
    hp = jax.lax.Precision.HIGHEST
    x0 = dnn_input.astype(jnp.float32)
    xl = x0
    for l in range(params["cross_w"].shape[1]):
        w = params["cross_w"][:, l]
        b = params["cross_b"][:, l]
        xl_w = jnp.dot(xl, w, precision=hp)[:, None]
        xl = x0 * xl_w + b[None, :] + xl
    h = jnp.maximum(jnp.dot(x0, params["w1"], precision=hp) + params["b1"][None, :], 0.0)
    h = jnp.maximum(jnp.dot(h, params["w2"], precision=hp) + params["b2"][None, :], 0.0)
    stack = jnp.concatenate([xl, h], axis=-1)
    logit = jnp.dot(stack, params["w_final"], precision=hp)
    return 1.0 / (1.0 + jnp.exp(-logit))


# -------------------------------- main -------------------------------------- #
if __name__ == "__main__":
    key = jax.random.PRNGKey(0)
    init_std = 0.05   # module default is 1e-4; larger here so the numeric check is non-trivial
    emb_dim = 8
    B = 256
    cross_num = 2
    dnn_hidden = (256, 128)

    # Feature config: 3 SparseFeat, 1 VarLenSparseFeat (maxlen 4), 2 DenseFeat (3+2).
    sparse_vocabs = [10, 20, 30]
    varlen_vocabs = [15]
    maxlen = 4
    dense_dims = [3, 2]
    dense_len = sum(dense_dims)
    D = (len(sparse_vocabs) + len(varlen_vocabs)) * emb_dim + dense_len  # 37

    keys = iter(jax.random.split(key, 32))
    sparse_tables = [init_std * jax.random.normal(next(keys), (v, emb_dim), jnp.float32)
                     for v in sparse_vocabs]
    varlen_tables = [init_std * jax.random.normal(next(keys), (v, emb_dim), jnp.float32)
                     for v in varlen_vocabs]
    params = dict(
        cross_w=init_std * jax.random.normal(next(keys), (D, cross_num), jnp.float32),
        cross_b=init_std * jax.random.normal(next(keys), (D, cross_num), jnp.float32),
        w1=init_std * jax.random.normal(next(keys), (D, dnn_hidden[0]), jnp.float32),
        b1=init_std * jax.random.normal(next(keys), (dnn_hidden[0],), jnp.float32),
        w2=init_std * jax.random.normal(next(keys), (dnn_hidden[0], dnn_hidden[1]), jnp.float32),
        b2=init_std * jax.random.normal(next(keys), (dnn_hidden[1],), jnp.float32),
        w_final=init_std * jax.random.normal(next(keys), (D + dnn_hidden[1], 1), jnp.float32),
    )

    # Synthetic input X columns: sparse ids, varlen id sequences (0 = pad), dense values.
    sparse_ids = jnp.stack(
        [jax.random.randint(next(keys), (B,), 1, v, jnp.int32) for v in sparse_vocabs], axis=1)
    varlen_ids = jax.random.randint(next(keys), (B, len(varlen_vocabs), maxlen),
                                    0, varlen_vocabs[0], jnp.int32)
    dense_vals = jax.random.normal(next(keys), (B, dense_len), jnp.float32)

    # Glue: embedding gathers + varlen pooling + concat -> transposed combined_dnn_input.
    dnn_input_t = build_dnn_input_t(sparse_ids, varlen_ids, sparse_tables,
                                    varlen_tables, dense_vals)          # [D, B]

    # Pallas kernel: CrossNet + DNN tower + dnn_linear + sigmoid, batch-tiled.
    out = deepcross_pallas(dnn_input_t, params)
    out = jax.block_until_ready(out)

    ref = deepcross_reference(dnn_input_t.T, params)
    assert out.shape == (B, 1), out.shape
    # bf16-fed MXU + approx reciprocal: slightly looser tolerance than the f32 path.
    assert jnp.allclose(out, ref, atol=2e-3, rtol=1e-2), float(jnp.max(jnp.abs(out - ref)))

    print("KERNEL_OK")
</pallas_src>

<mosaic_0001>
module attributes {stable_mosaic.version = 11 : i64} {
  func.func @kernel(%arg0: i32, %arg1: memref<37x128xf32, #tpu.memory_space<vmem>>, %arg2: memref<37x5xf32, #tpu.memory_space<vmem>>, %arg3: memref<512x1xf32, #tpu.memory_space<vmem>>, %arg4: memref<256x37xbf16, #tpu.memory_space<vmem>>, %arg5: memref<128x256xbf16, #tpu.memory_space<vmem>>, %arg6: memref<1x128xf32, #tpu.memory_space<vmem>>) attributes {dimension_semantics = [#tpu.dimension_semantics<parallel>], iteration_bounds = array<i64: 2>, scalar_prefetch = 0 : i64, scratch_operands = 0 : i64, tpu.core_type = #tpu.core_type<tc>, window_params = [{transform_indices = @transform_0, window_bounds = array<i64: 37, 128>}, {pipeline_mode = #tpu.pipeline_mode<synchronous>, transform_indices = @transform_1, window_bounds = array<i64: 37, 5>}, {pipeline_mode = #tpu.pipeline_mode<synchronous>, transform_indices = @transform_2, window_bounds = array<i64: 512, 1>}, {pipeline_mode = #tpu.pipeline_mode<synchronous>, transform_indices = @transform_3, window_bounds = array<i64: 256, 37>}, {pipeline_mode = #tpu.pipeline_mode<synchronous>, transform_indices = @transform_4, window_bounds = array<i64: 128, 256>}, {transform_indices = @transform_5, window_bounds = array<i64: 1, 128>}]} {
    %c0 = arith.constant 0 : index
    %c0_0 = arith.constant 0 : index
    %0 = vector.load %arg1[%c0, %c0_0] : memref<37x128xf32, #tpu.memory_space<vmem>>, vector<37x128xf32>
    %c0_1 = arith.constant 0 : index
    %c0_2 = arith.constant 0 : index
    %1 = vector.load %arg2[%c0_1, %c0_2] : memref<37x5xf32, #tpu.memory_space<vmem>>, vector<37x5xf32>
    %c0_3 = arith.constant 0 : index
    %c0_4 = arith.constant 0 : index
    %2 = vector.load %arg3[%c0_3, %c0_4] : memref<512x1xf32, #tpu.memory_space<vmem>>, vector<512x1xf32>
    %3 = vector.extract_strided_slice %1 {offsets = [0, 0], sizes = [37, 1], strides = [1, 1]} : vector<37x5xf32> to vector<37x1xf32>
    %4 = vector.extract_strided_slice %1 {offsets = [0, 2], sizes = [37, 1], strides = [1, 1]} : vector<37x5xf32> to vector<37x1xf32>
    %5 = vector.broadcast %3 : vector<37x1xf32> to vector<37x128xf32>
    %6 = arith.mulf %0, %5 : vector<37x128xf32>
    %cst = arith.constant dense<0.000000e+00> : vector<128xf32>
    %7 = vector.multi_reduction <add>, %6, %cst [0] : vector<37x128xf32> to vector<128xf32>
    %8 = vector.shape_cast %7 : vector<128xf32> to vector<1x128xf32>
    %9 = vector.broadcast %8 : vector<1x128xf32> to vector<37x128xf32>
    %10 = arith.mulf %0, %9 : vector<37x128xf32>
    %11 = vector.broadcast %4 : vector<37x1xf32> to vector<37x128xf32>
    %12 = arith.addf %10, %11 : vector<37x128xf32>
    %13 = arith.addf %12, %0 : vector<37x128xf32>
    %14 = vector.extract_strided_slice %1 {offsets = [0, 1], sizes = [37, 1], strides = [1, 1]} : vector<37x5xf32> to vector<37x1xf32>
    %15 = vector.extract_strided_slice %1 {offsets = [0, 3], sizes = [37, 1], strides = [1, 1]} : vector<37x5xf32> to vector<37x1xf32>
    %16 = vector.broadcast %14 : vector<37x1xf32> to vector<37x128xf32>
    %17 = arith.mulf %13, %16 : vector<37x128xf32>
    %cst_5 = arith.constant dense<0.000000e+00> : vector<128xf32>
    %18 = vector.multi_reduction <add>, %17, %cst_5 [0] : vector<37x128xf32> to vector<128xf32>
    %19 = vector.shape_cast %18 : vector<128xf32> to vector<1x128xf32>
    %20 = vector.broadcast %19 : vector<1x128xf32> to vector<37x128xf32>
    %21 = arith.mulf %0, %20 : vector<37x128xf32>
    %22 = vector.broadcast %15 : vector<37x1xf32> to vector<37x128xf32>
    %23 = arith.addf %21, %22 : vector<37x128xf32>
    %24 = arith.addf %23, %13 : vector<37x128xf32>
    %25 = vector.extract_strided_slice %1 {offsets = [0, 4], sizes = [37, 1], strides = [1, 1]} : vector<37x5xf32> to vector<37x1xf32>
    %26 = vector.extract_strided_slice %2 {offsets = [0, 0], sizes = [256, 1], strides = [1, 1]} : vector<512x1xf32> to vector<256x1xf32>
    %27 = vector.extract_strided_slice %2 {offsets = [256, 0], sizes = [128, 1], strides = [1, 1]} : vector<512x1xf32> to vector<128x1xf32>
    %28 = vector.extract_strided_slice %2 {offsets = [384, 0], sizes = [128, 1], strides = [1, 1]} : vector<512x1xf32> to vector<128x1xf32>
    %29 = arith.truncf %0 : vector<37x128xf32> to vector<37x128xbf16>
    %c0_6 = arith.constant 0 : index
    %c0_7 = arith.constant 0 : index
    %30 = vector.load %arg4[%c0_6, %c0_7] : memref<256x37xbf16, #tpu.memory_space<vmem>>, vector<256x37xbf16>
    %cst_8 = arith.constant dense<0.000000e+00> : vector<256x128xf32>
    %31 = tpu.matmul %30, %29, %cst_8 {dimension_numbers = #tpu.dot_dimension_numbers<[1], [0], [0], [1], [0, 0, 1, 1], [], []>} : vector<256x37xbf16>, vector<37x128xbf16>, vector<256x128xf32> -> vector<256x128xf32>
    %32 = vector.broadcast %26 : vector<256x1xf32> to vector<256x128xf32>
    %33 = arith.addf %31, %32 : vector<256x128xf32>
    %cst_9 = arith.constant 0.000000e+00 : f32
    %34 = vector.broadcast %cst_9 : f32 to vector<256x128xf32>
    %35 = arith.maximumf %33, %34 : vector<256x128xf32>
    %c0_10 = arith.constant 0 : index
    %c0_11 = arith.constant 0 : index
    %36 = vector.load %arg5[%c0_10, %c0_11] : memref<128x256xbf16, #tpu.memory_space<vmem>>, vector<128x256xbf16>
    %37 = arith.truncf %35 : vector<256x128xf32> to vector<256x128xbf16>
    %cst_12 = arith.constant dense<0.000000e+00> : vector<128x128xf32>
    %38 = tpu.matmul %36, %37, %cst_12 {dimension_numbers = #tpu.dot_dimension_numbers<[1], [0], [0], [1], [0, 0, 1, 1], [], []>} : vector<128x256xbf16>, vector<256x128xbf16>, vector<128x128xf32> -> vector<128x128xf32>
    %39 = vector.broadcast %27 : vector<128x1xf32> to vector<128x128xf32>
    %40 = arith.addf %38, %39 : vector<128x128xf32>
    %cst_13 = arith.constant 0.000000e+00 : f32
    %41 = vector.broadcast %cst_13 : f32 to vector<128x128xf32>
    %42 = arith.maximumf %40, %41 : vector<128x128xf32>
    %43 = vector.broadcast %25 : vector<37x1xf32> to vector<37x128xf32>
    %44 = arith.mulf %24, %43 : vector<37x128xf32>
    %cst_14 = arith.constant dense<0.000000e+00> : vector<128xf32>
    %45 = vector.multi_reduction <add>, %44, %cst_14 [0] : vector<37x128xf32> to vector<128xf32>
    %46 = vector.shape_cast %45 : vector<128xf32> to vector<1x128xf32>
    %47 = vector.broadcast %28 : vector<128x1xf32> to vector<128x128xf32>
    %48 = arith.mulf %42, %47 : vector<128x128xf32>
    %cst_15 = arith.constant dense<0.000000e+00> : vector<128xf32>
    %49 = vector.multi_reduction <add>, %48, %cst_15 [0] : vector<128x128xf32> to vector<128xf32>
    %50 = vector.shape_cast %49 : vector<128xf32> to vector<1x128xf32>
    %51 = arith.addf %46, %50 : vector<1x128xf32>
    %cst_16 = arith.constant 0.000000e+00 : f32
    %52 = vector.broadcast %cst_16 : f32 to vector<1x128xf32>
    %53 = arith.subf %52, %51 : vector<1x128xf32>
    %54 = math.exp %53 : vector<1x128xf32>
    %cst_17 = arith.constant 1.000000e+00 : f32
    %55 = vector.broadcast %cst_17 : f32 to vector<1x128xf32>
    %56 = arith.addf %55, %54 : vector<1x128xf32>
    %57 = tpu.reciprocal %56 {approx = true} : vector<1x128xf32> -> vector<1x128xf32>
    %c0_18 = arith.constant 0 : index
    %c0_19 = arith.constant 0 : index
    %58 = vector.load %arg6[%c0_18, %c0_19] : memref<1x128xf32, #tpu.memory_space<vmem>>, vector<1x128xf32>
    tpu.vector_store %arg6[%c0_18, %c0_19], %57 {strides = array<i32>} : memref<1x128xf32, #tpu.memory_space<vmem>>, vector<1x128xf32>,
    return
  }
  func.func @transform_0(%arg0: i32) -> (i32, i32) {
    %c0_i32 = arith.constant 0 : i32
    %c0_i32_0 = arith.constant 0 : i32
    return %c0_i32, %arg0 : i32, i32
  }
  func.func @transform_1(%arg0: i32) -> (i32, i32) {
    %c0_i32 = arith.constant 0 : i32
    %c0_i32_0 = arith.constant 0 : i32
    %c0_i32_1 = arith.constant 0 : i32
    return %c0_i32, %c0_i32_0 : i32, i32
  }
  func.func @transform_2(%arg0: i32) -> (i32, i32) {
    %c0_i32 = arith.constant 0 : i32
    %c0_i32_0 = arith.constant 0 : i32
    %c0_i32_1 = arith.constant 0 : i32
    return %c0_i32, %c0_i32_0 : i32, i32
  }
  func.func @transform_3(%arg0: i32) -> (i32, i32) {
    %c0_i32 = arith.constant 0 : i32
    %c0_i32_0 = arith.constant 0 : i32
    %c0_i32_1 = arith.constant 0 : i32
    return %c0_i32, %c0_i32_0 : i32, i32
  }
  func.func @transform_4(%arg0: i32) -> (i32, i32) {
    %c0_i32 = arith.constant 0 : i32
    %c0_i32_0 = arith.constant 0 : i32
    %c0_i32_1 = arith.constant 0 : i32
    return %c0_i32, %c0_i32_0 : i32, i32
  }
  func.func @transform_5(%arg0: i32) -> (i32, i32) {
    %c0_i32 = arith.constant 0 : i32
    %c0_i32_0 = arith.constant 0 : i32
    return %c0_i32, %arg0 : i32, i32
  }
}

</mosaic_0001>

<bundles_post_ra>
// kernel: tpu_custom_call.1
= control target key start
LH: loop header
LB: loop body
LE: loop exit
PB: predicated region body
PF: predicated region fallthrough
CT: control target
= control target key end

     0   :  { %10 = vsyncpa [#allocation4], 0  ;;  %s2620_s0 = inlined_call_operand.vmem [shape: f32[37,256], index: 0, kind: input, shape index: {}]   ;;  %s2621_s1 = inlined_call_operand.vmem [shape: f32[37,5], index: 1, kind: input, shape index: {}]   ;;  %s2622_s2 = inlined_call_operand.vmem [shape: f32[512,1], index: 2, kind: input, shape index: {}]   ;;  %s2623_s3 = inlined_call_operand.vmem [shape: bf16[256,37], index: 3, kind: input, shape index: {}]   ;;  %s2624_s4 = inlined_call_operand.vmem [shape: bf16[128,256], index: 4, kind: input, shape index: {}]   ;;  %s2625_s5 = inlined_call_operand.hbm [shape: f32[1,256], index: 5, kind: output, shape index: {}]  }
   0x1   :  { %12 = vsyncpa [#allocation4 + $0x1], 0  ;;  %s1845_s18 = smov 0   ;;  %s1847_s19 = smov 0  }
   0x2   :  { %s1849_s20 = smov 0   ;;  %s1851_s21 = smov 0  }
   0x3 LB: > { %s1487_s22 = sadd.s32 4294967295, %s1807_s21   ;;  %s1488_s23 = sadd.s32 4294967294, %s1807_s21   ;;  %s1807_s21 = sphi %s1851_s21, %s2631_s21   ;;  %s1803_s20 = sphi %s1849_s20, %s2630_s20   ;;  %s1799_s19 = sphi %s1847_s19, %s2629_s19   ;;  %s1795_s18 = sphi %s1845_s18, %s2628_s18  }
   0x4   : > { %s1868_s24 = sadd.s32 1, %s1807_s21   ;;  %s25_s25 = sadd.s32 1, %s1803_s20 }
   0x5   : > { %s22_s26 = ssub.s32 %s1807_s21, %s1868_s24  ;;  %p32_p0 = scmp.ne.s32.totalorder %s1803_s20, %s1799_s19 }
   0x6   : > { %p23_p1 = scmp.eq.s32.totalorder %s22_s26, 0  ;;  %p33_p2 = scmp.eq.s32.totalorder %s1807_s21, 0 }
   0x7   : > { %p146_p3 = scmp.eq.s32.totalorder %s1487_s22, 1  ;;  %p151_p4 = scmp.ne.s32.totalorder %s1799_s19, %s1795_s18 }
   0x8   : > { %s1881_s27 = scalar_select %p23_p1, %s1803_s20, %s25_s25  }
   0x9   : > { %p34_p5 = por %p33_p2, %p32_p0  ;;  %p1883_p6 = por %p146_p3, %p32_p0 }
   0xa   : > { %p152_p7 = scmp.eq.s32.totalorder %s1488_s23, 1  ;;  %p1490_p9 = scmp.ge.s32.totalorder %s1807_s21, 2 }
   0xc   : > { %p1887_p8 = por %p152_p7, %p151_p4  ;;  %180 = sbr.rel (%p1490_p9) target bundleno = 26 (0x1a), region = 32 }
  0x11   : > { %183 = sbr.rel (!%p34_p5) target bundleno = 26 (0x1a), region = 36  ;;  %s185_s30 = sand.u32 (%p34_p5), 1, %s1803_s20  }
  0x12   : > { %s1491_s6 = sshll.u32 (%p34_p5), %s1807_s21, 3  ;;  %s1674_s7 = smul.u32 (%p34_p5), 40, %s185_s30 }
  0x13   : > { %s189_s10 = scalar_lea.vmem (%p34_p5), %s2620_s0, %s1491_s6 }
  0x14   : > { %v226_v0 = vld [vmem:[%s189_s10] sm:$0xff] (%p34_p5)  ;;  %v228_v1 = vld [vmem:[%s189_s10 + $0x10] sm:$0xff] (%p34_p5)  ;;  %s187_s11 = scalar_lea.vmem (%p34_p5), [#allocation2], %s1674_s7 }
  0x15   : > { %v230_v2 = vld [vmem:[%s189_s10 + $0x20] sm:$0xff] (%p34_p5)  ;;  %227 = vst [vmem:[%s187_s11] sm:$0xff] (%p34_p5), %v226_v0  ;;  %v232_v3 = vld [vmem:[%s189_s10 + $0x30] sm:$0xff] (%p34_p5) }
  0x16   : > { %229 = vst [vmem:[%s187_s11 + $0x8] sm:$0xff] %v228_v1  ;;  %v234_v4 = vld [vmem:[%s189_s10 + $0x40] sm:$0xff] }
  0x17   : > { %231 = vst [vmem:[%s187_s11 + $0x10] sm:$0xff] %v230_v2 }
  0x18   : > { %233 = vst [vmem:[%s187_s11 + $0x18] sm:$0xff] %v232_v3 }
  0x19   : > { %235 = vst [vmem:[%s187_s11 + $0x20] sm:$0xff] %v234_v4 }
  0x1a PF: > { %p1492_p10 = scmp.ge.s32.totalorder %s1807_s21, 1  ;;  %p240_p11 = scmp.lt.s32.totalorder %s1807_s21, 3 }
  0x1c   : > { %p241_p12 = pnand %p1492_p10, %p240_p11 }
  0x1d   : > { %s1918_s23 = sand.u32 (!%p241_p12), 1, %s1799_s19   ;;  %s1423_s10 = scalar_lea.hbm (!%p241_p12), %s2625_s5, %s1487_s22 }
  0x1e   : > { %244 = sbr.rel (%p241_p12) target bundleno = 630 (0x276), region = 74  ;;  %s272_s11 = scalar_lea.vmem (!%p241_p12), [#allocation3], %s1918_s23 }
  0x1f   : > { %s1675_s25 = smul.u32 (!%p241_p12), 40, %s1918_s23  ;;  %s1425_s12 = sshll.u32 (!%p241_p12), %s272_s11, 4  ;;  %s1426_s12 = int_to_ptr.vmem [resolvable:$true] %s1425_s12 }
  0x20   : > { %s1427_s13 = sshll.u32 (!%p241_p12), %s1423_s10, 4  ;;  %s1415_s14 = scalar_lea.sflag (!%p241_p12), [#allocation4], %s1918_s23  ;;  %s1428_s13 = int_to_ptr.hbm [resolvable:$true] %s1427_s13 }
  0x21   : > { %s249_s26 = scalar_lea.vmem (!%p241_p12), [#allocation2], %s1675_s25  ;;  %s1759_s15 = sshra.s32 (!%p241_p12), %s1428_s13, 4  ;;  %s1760_s15 = int_to_ptr.hbm [resolvable:$true] %s1759_s15 }
  0x22   : > { %s1761_s16 = scalar_lea.hbm (!%p241_p12), %s1760_s15, 1  ;;  %s1765_s22 = scalar_lea.hbm (!%p241_p12), %s2625_s5, 2 }
  0x23   : > { %v1904_v5 = vld [vmem:[%s2621_s1 + $0x20] sm:$0x1f]  ;;  %v1909_v6 = vld [vmem:[%s2621_s1 + $0x10] sm:$0xff]  ;;  %v1914_v7 = vld [vmem:[%s2621_s1 + $0x8] sm:$0xff]  ;;  %v1809_v8 = vmov 2   ;;  %v1810_v9 = vmov 0   ;;  %p1762_p13 = scmp.ne.s32.totalorder %s1760_s15, %s1761_s16  ;;  %p1766_p2 = scmp.lt.s32.totalorder %s1760_s15, %s2625_s5 }
  0x24   : > { %1724 = vset.pattern.permute.xlu0 %v1809_v8  ;;  %1722 = vset.pattern.permute.xlu2 %v1810_v9  ;;  %vm820_vm0 = vcmask 1041408   ;;  %vm821_vm1 = vcmask 1042432   ;;  %v1811_v10 = vmov 65535   ;;  %v1925_v12 = vld [vmem:[%s249_s26 + $0x20] sm:$0x1f]  ;;  %v1929_v15 = vld [vmem:[%s249_s26 + $0x10] sm:$0xff]  ;;  %p1767_p3 = scmp.lt.s32.totalorder %s1765_s22, %s1761_s16 }
  0x25   : > { %1721 = vset.pattern.permute.xlu1 %v1810_v9  ;;  %370 = vperm.xlu2 %1722, %v1904_v5   ;;  %v822_v11 = vsel %vm820_vm0, 4294967295, %v1811_v10  ;;  %v498_v14 = vpack.c.bf16 %v1925_v12, %v1925_v12  ;;  %v1931_v16 = vld [vmem:[%s249_s26 + $0x18] sm:$0xff]  ;;  %v1946_v21 = vld [vmem:[%s249_s26] sm:$0xff]  ;;  %v1948_v22 = vld [vmem:[%s249_s26 + $0x8] sm:$0xff]  ;;  %v1812_v23 = vmov 1   ;;  %vm771_vm2 = vcmask 302080   ;;  %p1763_p0 = pnand %p1762_p13, %p1883_p6 }
  0x26   : > { %360 = vperm.xlu1 %1721, %v1909_v6   ;;  %400 = vperm.xlu0 %1724, %v1914_v7   ;;  %v823_v13 = vsel %vm821_vm1, %v822_v11, 0  ;;  %v1936_v18 = vld [vmem:[%s2621_s1 + $0x18] sm:$0xff]  ;;  %v1941_v19 = vld [vmem:[%s2621_s1] sm:$0xff]  ;;  %v497_v20 = vpack.c.bf16 %v1931_v16, %v1929_v15  ;;  %v496_v24 = vpack.c.bf16 %v1948_v22, %v1946_v21  ;;  %v1648_v26 = vld [vmem:[%s2623_s3 + $0x48] sm:$0xff]  ;;  %v1813_v27 = vmov 3   ;;  %p1768_p4 = por %p1767_p3, %p1766_p2 }
  0x27   : > { %v825_v17 = vand.u32 %v823_v13, %v498_v14  ;;  %v1639_v25 = vld [vmem:[%s2623_s3] sm:$0xff]  ;;  %v1640_v28 = vld [vmem:[%s2623_s3 + $0x8] sm:$0xff]  ;;  %v1649_v29 = vld [vmem:[%s2623_s3 + $0x50] sm:$0xff]  ;;  %vm381_vm3 = vcmask 1044480   ;;  %p1764_p1 = pneg %p1763_p0 }
  0x28   : > { %v285_v30 = vld [vmem:[%s2622_s2 + $0x8] sm:$0xff]  ;;  %v1641_v31 = vld [vmem:[%s2623_s3 + $0x10] sm:$0xff]  ;;  %v1650_v32 = vld [vmem:[%s2623_s3 + $0x58] sm:$0xff] }
  0x29   : > { %832 = vmatpush.bf16.msra.mxu0 %v825_v17  ;;  %1671 = vmatpush.bf16.msra.mxu3 %v825_v17  ;;  %v290_v33 = vld [vmem:[%s2622_s2 + $0x30] sm:$0xff]  ;;  %v315_v34 = vld [vmem:[%s2622_s2 + $0xf8] sm:$0xff]  ;;  %v284_v35 = vld [vmem:[%s2622_s2] sm:$0xff]  ;;  %p1769_p5 = pnand %p1768_p4, %p1764_p1 }
  0x2a   : > { %v1642_v36 = vld [vmem:[%s2623_s3 + $0x18] sm:$0xff]  ;;  %v1651_v37 = vld [vmem:[%s2623_s3 + $0x60] sm:$0xff]  ;;  %v286_v39 = vld [vmem:[%s2622_s2 + $0x10] sm:$0xff] }
  0x2b   : > { %v312_v38 = vld [vmem:[%s2622_s2 + $0xe0] sm:$0xff]  ;;  %v287_v40 = vld [vmem:[%s2622_s2 + $0x18] sm:$0xff]  ;;  %v297_v41 = vld [vmem:[%s2622_s2 + $0x68] sm:$0xff] }
  0x2c   : > { %v288_v42 = vld [vmem:[%s2622_s2 + $0x20] sm:$0xff]  ;;  %v289_v43 = vld [vmem:[%s2622_s2 + $0x28] sm:$0xff]  ;;  %v294_v46 = vld [vmem:[%s2622_s2 + $0x50] sm:$0xff] }
  0x2d   : > { %1723 = vset.pattern.permute.xlu2 %v1809_v8  ;;  %833 = vmatpush.bf16.msra.mxu0 %v497_v20  ;;  %v1643_v44 = vld [vmem:[%s2623_s3 + $0x20] sm:$0xff]  ;;  %v1652_v45 = vld [vmem:[%s2623_s3 + $0x68] sm:$0xff]  ;;  %v291_v47 = vld [vmem:[%s2622_s2 + $0x38] sm:$0xff] }
  0x2e   : > { %365 = vperm.xlu1 %1721, %v1936_v18   ;;  %1727 = vset.pattern.permute.xlu0 %v1812_v23  ;;  %v314_v48 = vld [vmem:[%s2622_s2 + $0xf0] sm:$0xff]  ;;  %v309_v49 = vld [vmem:[%s2622_s2 + $0xc8] sm:$0xff]  ;;  %v299_v52 = vld [vmem:[%s2622_s2 + $0x78] sm:$0xff] }
  0x2f   : > { %396 = vperm.xlu2 %1723, %v1941_v19   ;;  %430 = vperm.xlu0 %1727, %v1914_v7   ;;  %v298_v51 = vld [vmem:[%s2622_s2 + $0x70] sm:$0xff]  ;;  %v1644_v53 = vld [vmem:[%s2623_s3 + $0x28] sm:$0xff]  ;;  %v296_v57 = vld [vmem:[%s2622_s2 + $0x60] sm:$0xff] }
  0x30   : > { %1672 = vmatpush.bf16.msra.mxu3 %v497_v20  ;;  %v1653_v54 = vld [vmem:[%s2623_s3 + $0x70] sm:$0xff]  ;;  %v313_v56 = vld [vmem:[%s2622_s2 + $0xe8] sm:$0xff]  ;;  %v311_v61 = vld [vmem:[%s2622_s2 + $0xd8] sm:$0xff] }
  0x31   : > { %834 = vmatpush.bf16.msra.mxu0 %v496_v24  ;;  %v306_v55 = vld [vmem:[%s2622_s2 + $0xb0] sm:$0xff]  ;;  %v305_v59 = vld [vmem:[%s2622_s2 + $0xa8] sm:$0xff]  ;;  %v1654_v0 = vld [vmem:[%s2623_s3 + $0x78] sm:$0xff] }
  0x32   : > { %v310_v60 = vld [vmem:[%s2622_s2 + $0xd0] sm:$0xff]  ;;  %v300_v1 = vld [vmem:[%s2622_s2 + $0x80] sm:$0xff]  ;;  %v295_v2 = vld [vmem:[%s2622_s2 + $0x58] sm:$0xff] }
  0x33   : > { %v1645_v63 = vld [vmem:[%s2623_s3 + $0x30] sm:$0xff]  ;;  %v317_v11 = vld [vmem:[%s2622_s2 + $0x108] sm:$0xff]  ;;  %v292_v13 = vld [vmem:[%s2622_s2 + $0x40] sm:$0xff] }
  0x34   : > { %1673 = vmatpush.bf16.msra.mxu3 %v496_v24  ;;  %1557 = vmatmul.msk.bf16.vlgmr.msra.gmra.mxu0 %vm771_vm2, %v1639_v25  ;;  %v293_v17 = vld [vmem:[%s2622_s2 + $0x48] sm:$0xff]  ;;  %v1646_v24 = vld [vmem:[%s2623_s3 + $0x38] sm:$0xff]  ;;  %v320_v25 = vld [vmem:[%s2622_s2 + $0x120] sm:$0xff] }
  0x36   : > { %1725 = vset.pattern.permute.xlu1 %v1809_v8  ;;  %v308_v8 = vld [vmem:[%s2622_s2 + $0xc0] sm:$0xff] }
  0x37   : > { %404 = vperm.xlu1 %1725, %v1909_v6   ;;  %408 = vperm.xlu2 %1723, %v1936_v18  }
  0x38   : > { %1730 = vset.pattern.permute.xlu0 %v1813_v27  ;;  %1566 = vmatmul.msk.bf16.vlgmr.msra.gmra.mxu3 %vm771_vm2, %v1648_v26  ;;  %v307_v26 = vld [vmem:[%s2622_s2 + $0xb8] sm:$0xff] }
  0x39   : > { %471 = vperm.xlu0 %1730, %v1914_v7  }
  0x3f   : > { %412 = vperm.xlu1 %1725, %v1904_v5   ;;  %1726 = vset.pattern.permute.xlu2 %v1812_v23 }
  0x40   : > { %426 = vperm.xlu2 %1726, %v1941_v19  }
  0x41   : > { %1731 = vset.pattern.permute.xlu0 %v1810_v9 }
  0x42   : > { %350 = vperm.xlu0 %1731, %v1941_v19  }
  0x44   : > { %1558 = vmatmul.msk.bf16.gmra.mxu0 %vm771_vm2, %v1640_v28 }
  0x47   : > { %1728 = vset.pattern.permute.xlu1 %v1812_v23 }
  0x48   : > { %434 = vperm.xlu1 %1728, %v1909_v6   ;;  %438 = vperm.xlu2 %1726, %v1936_v18  }
  0x49   : > { %1567 = vmatmul.msk.bf16.gmra.mxu3 %vm771_vm2, %v1649_v29 }
  0x4a   : > { %355 = vperm.xlu0 %1731, %v1914_v7  }
  0x50   : > { %442 = vperm.xlu1 %1728, %v1904_v5   ;;  %1729 = vset.pattern.permute.xlu2 %v1813_v27 }
  0x51   : > { %467 = vperm.xlu2 %1729, %v1941_v19  }
  0x52   : > { %538 = vperm.xlu0 %1731, %v285_v30  }
  0x54   : > { %1559 = vmatmul.msk.bf16.gmra.mxu0 %vm771_vm2, %v1641_v31  ;;  %v323_v31 = vld [vmem:[%s2622_s2 + $0x138] sm:$0xff] }
  0x58   : > { %1732 = vset.pattern.permute.xlu1 %v1813_v27  ;;  %v304_v27 = vld [vmem:[%s2622_s2 + $0xa0] sm:$0xff] }
  0x59   : > { %1568 = vmatmul.msk.bf16.gmra.mxu3 %vm771_vm2, %v1650_v32  ;;  %475 = vperm.xlu1 %1732, %v1909_v6   ;;  %v302_v32 = vld [vmem:[%s2622_s2 + $0x90] sm:$0xff] }
  0x5a   : > { %563 = vperm.xlu0 %1731, %v290_v33   ;;  %479 = vperm.xlu2 %1729, %v1936_v18   ;;  %v303_v33 = vld [vmem:[%s2622_s2 + $0x98] sm:$0xff] }
  0x61   : > { %483 = vperm.xlu1 %1732, %v1904_v5  }
  0x62   : > { %688 = vperm.xlu0 %1731, %v315_v34   ;;  %1733 = vset.pattern.permute.xlu2 %v1810_v9 }
  0x63   : > { %533 = vperm.xlu2 %1733, %v284_v35  }
  0x64   : > { %1560 = vmatmul.msk.bf16.gmra.mxu0 %vm771_vm2, %v1642_v36 }
  0x69   : > { %1569 = vmatmul.msk.bf16.gmra.mxu3 %vm771_vm2, %v1651_v37  ;;  %1734 = vset.pattern.permute.xlu1 %v1810_v9 }
  0x6a   : > { %673 = vperm.xlu0 %1731, %v312_v38   ;;  %543 = vperm.xlu1 %1734, %v286_v39   ;;  %v1647_v38 = vld [vmem:[%s2623_s3 + $0x40] sm:$0xff]  ;;  %v326_v39 = vld [vmem:[%s2622_s2 + $0x150] sm:$0xff] }
  0x6b   : > { %548 = vperm.xlu2 %1733, %v287_v40   ;;  %v301_v40 = vld [vmem:[%s2622_s2 + $0x88] sm:$0xff] }
  0x72   : > { %598 = vperm.xlu0 %1731, %v297_v41   ;;  %553 = vperm.xlu1 %1734, %v288_v42   ;;  %v316_v41 = vld [vmem:[%s2622_s2 + $0x100] sm:$0xff] }
  0x73   : > { %558 = vperm.xlu2 %1733, %v289_v43  }
  0x74   : > { %1561 = vmatmul.msk.bf16.gmra.mxu0 %vm771_vm2, %v1643_v44 }
  0x79   : > { %1570 = vmatmul.msk.bf16.gmra.mxu3 %vm771_vm2, %v1652_v45 }
  0x7a   : > { %583 = vperm.xlu0 %1731, %v294_v46   ;;  %568 = vperm.xlu1 %1734, %v291_v47  }
  0x7b   : > { %683 = vperm.xlu2 %1733, %v314_v48  }
  0x7f   : > { %v2053_v50 = vpop.permute.xlu2 %370 }
  0x82   : > { %658 = vperm.xlu0 %1731, %v309_v49   ;;  %603 = vperm.xlu1 %1734, %v298_v51  }
  0x83   : > { %608 = vperm.xlu2 %1733, %v299_v52  }
  0x84   : > { %1562 = vmatmul.msk.bf16.gmra.mxu0 %vm771_vm2, %v1644_v53  ;;  %v329_v53 = vld [vmem:[%s2622_s2 + $0x168] sm:$0xff] }
  0x89   : > { %1571 = vmatmul.msk.bf16.gmra.mxu3 %vm771_vm2, %v1653_v54  ;;  %v2078_v58 = vpop.permute.xlu2 %396  ;;  %v377_v54 = vmul.f32 %v2053_v50, %v1925_v12 }
  0x8a   : > { %643 = vperm.xlu0 %1731, %v306_v55   ;;  %678 = vperm.xlu1 %1734, %v313_v56   ;;  %v318_v55 = vld [vmem:[%s2622_s2 + $0x110] sm:$0xff] }
  0x8b   : > { %593 = vperm.xlu2 %1733, %v296_v57  }
  0x91   : > { %v2089_v62 = vpop.permute.xlu2 %408 }
  0x92   : > { %638 = vperm.xlu0 %1731, %v305_v59   ;;  %663 = vperm.xlu1 %1734, %v310_v60   ;;  %v319_v59 = vld [vmem:[%s2622_s2 + $0x118] sm:$0xff] }
  0x93   : > { %668 = vperm.xlu2 %1733, %v311_v61  }
  0x94   : > { %1563 = vmatmul.msk.bf16.gmra.mxu0 %vm771_vm2, %v1645_v63  ;;  %v382_v63 = vsel %vm381_vm3, %v377_v54, 0.0 }
  0x98   : > { %v2103_v3 = vpop.permute.xlu0 %400  ;;  %v361_v4 = vpop.permute.xlu1 %360 }
  0x99   : > { %1572 = vmatmul.msk.bf16.gmra.mxu3 %vm771_vm2, %v1654_v0  ;;  %v375_v49 = vmul.f32 %v361_v4, %v1929_v15 }
  0x9a   : > { %613 = vperm.xlu0 %1731, %v300_v1   ;;  %v2110_v10 = vpop.permute.xlu2 %426  ;;  %588 = vperm.xlu1 %1734, %v295_v2  }
  0x9b   : > { %653 = vperm.xlu2 %1733, %v308_v8  }
  0xa0   : > { %v366_v14 = vpop.permute.xlu1 %365 }
  0xa1   : > { %v2121_v20 = vpop.permute.xlu0 %430  ;;  %v376_v56 = vmul.f32 %v366_v14, %v1931_v16 }
  0xa2   : > { %987 = vperm.xlu0 %1731, %v317_v11   ;;  %v2123_v23 = vpop.permute.xlu2 %438  ;;  %573 = vperm.xlu1 %1734, %v292_v13  }
  0xa3   : > { %578 = vperm.xlu2 %1733, %v293_v17   ;;  %v333_v17 = vld [vmem:[%s2622_s2 + $0x188] sm:$0xff] }
  0xa4   : > { %1564 = vmatmul.msk.bf16.gmra.mxu0 %vm771_vm2, %v1646_v24  ;;  %v321_v24 = vld [vmem:[%s2622_s2 + $0x128] sm:$0xff] }
  0xa9   : > { %v2138_v28 = vpop.permute.xlu1 %404 }
  0xaa   : > { %1002 = vperm.xlu0 %1731, %v320_v25   ;;  %648 = vperm.xlu1 %1734, %v307_v26   ;;  %v322_v26 = vld [vmem:[%s2622_s2 + $0x130] sm:$0xff] }
  0xab   : > { %v2140_v29 = vpop.permute.xlu0 %471  ;;  %v2142_v30 = vpop.permute.xlu2 %467  ;;  %633 = vperm.xlu2 %1733, %v304_v27  }
  0xb1   : > { %v2153_v34 = vpop.permute.xlu1 %412  ;;  %v836_v37 = vpop.f32.mrf.mxu0 }
  0xb2   : > { %1017 = vperm.xlu0 %1731, %v323_v31   ;;  %623 = vperm.xlu1 %1734, %v302_v32  }
  0xb3   : > { %628 = vperm.xlu2 %1733, %v303_v33  }
  0xb4   : > { %v351_v35 = vpop.permute.xlu0 %350  ;;  %v2155_v36 = vpop.permute.xlu2 %479  ;;  %1565 = vmatmul.msk.bf16.gmra.mxu0 %vm771_vm2, %v1647_v38 }
  0xb5   : > { %v373_v43 = vmul.f32 %v351_v35, %v1946_v21 }
  0xb9   : > { %v838_v47 = vpop.f32.mrf.mxu0 }
  0xba   : > { %1032 = vperm.xlu0 %1731, %v326_v39   ;;  %v2170_v42 = vpop.permute.xlu1 %434  ;;  %618 = vperm.xlu1 %1734, %v301_v40  }
  0xbb   : > { %982 = vperm.xlu2 %1733, %v316_v41   ;;  %v2173_v45 = vpop.f32.mrf.mxu3 }
  0xbc   : > { %v356_v44 = vpop.permute.xlu0 %355 }
  0xbd   : > { %v374_v46 = vmul.f32 %v356_v44, %v1948_v22  ;;  %v534_v48 = vpop.permute.xlu2 %533  ;;  %v324_v44 = vld [vmem:[%s2622_s2 + $0x140] sm:$0xff] }
  0xbe   : > { %v837_v52 = vadd.f32 %v836_v37, %v534_v48 }
  0xbf   : > { %v378_v51 = vadd.f32 %v374_v46, %v373_v43  ;;  %v338_v43 = vld [vmem:[%s2622_s2 + $0x1b0] sm:$0xff] }
  0xc0   : > { %v916_v13 = vmax.f32 %v837_v52, 0.0 }
  0xc1   : > { %v379_v57 = vadd.f32 %v378_v51, %v375_v49  ;;  %v2194_v8 = vpop.f32.mrf.mxu0 }
  0xc2   : > { %1047 = vperm.xlu0 %1731, %v329_v53   ;;  %992 = vperm.xlu1 %1734, %v318_v55   ;;  %v2189_v61 = vpop.permute.xlu1 %442 }
  0xc3   : > { %v380_v60 = vadd.f32 %v379_v57, %v376_v56  ;;  %997 = vperm.xlu2 %1733, %v319_v59   ;;  %v2192_v0 = vpop.f32.mrf.mxu3 }
  0xc4   : > { %v539_v50 = vpop.permute.xlu0 %538 }
  0xc5   : > { %v383_v1 = vadd.f32 %v382_v63, %v380_v60  ;;  %v839_v2 = vadd.f32 %v838_v47, %v539_v50  ;;  %v549_v4 = vpop.permute.xlu2 %548  ;;  %v325_v47 = vld [vmem:[%s2622_s2 + $0x148] sm:$0xff] }
  0xc7   : > { %v384_v11 = vrot.slane %v383_v1, 4  ;;  %v917_v14 = vmax.f32 %v839_v2, 0.0 }
  0xc9   : > { %v385_v25 = vadd.f32 %v384_v11, %v383_v1  ;;  %v2205_v27 = vpack.c.bf16 %v917_v14, %v916_v13  ;;  %v843_v39 = vpop.f32.mrf.mxu0 }
  0xca   : > { %1297 = vperm.xlu0 %1731, %v333_v17   ;;  %1007 = vperm.xlu1 %1734, %v321_v24   ;;  %v844_v41 = vadd.f32 %v843_v39, %v549_v4 }
  0xcb   : > { %v386_v31 = vrot.slane %v385_v25, 2  ;;  %1012 = vperm.xlu2 %1733, %v322_v26   ;;  %v2211_v37 = vpop.permute.xlu1 %475 }
  0xcc   : > { %v2207_v32 = vpop.permute.xlu0 %563  ;;  %v2209_v33 = vpop.f32.mrf.mxu3 }
  0xcd   : > { %v387_v35 = vadd.f32 %v386_v31, %v385_v25  ;;  %v559_v38 = vpop.permute.xlu2 %558  ;;  %v328_v25 = vld [vmem:[%s2622_s2 + $0x160] sm:$0xff] }
  0xcf   : > { %v388_v40 = vrot.slane %v387_v35, 1 }
  0xd1   : > { %v389_v46 = vadd.f32 %v388_v40, %v387_v35  ;;  %v846_v2 = vpop.f32.mrf.mxu0 }
  0xd2   : > { %1322 = vperm.xlu0 %1731, %v338_v43   ;;  %1022 = vperm.xlu1 %1734, %v324_v44  }
  0xd3   : > { %v390_v48 = vmul.f32 %v389_v46, %v1946_v21  ;;  %v391_v49 = vmul.f32 %v389_v46, %v1948_v22  ;;  %v392_v51 = vmul.f32 %v389_v46, %v1929_v15  ;;  %v393_v52 = vmul.f32 %v389_v46, %v1931_v16  ;;  %1027 = vperm.xlu2 %1733, %v325_v47   ;;  %v2235_v63 = vpop.permute.xlu1 %483 }
  0xd4   : > { %v394_v53 = vmul.f32 %v389_v46, %v1925_v12  ;;  %v2227_v54 = vpop.permute.xlu0 %688  ;;  %v2229_v55 = vpop.f32.mrf.mxu3  ;;  %v919_v47 = vmax.f32 %v844_v41, 0.0 }
  0xd5   : > { %v415_v56 = vadd.f32 %v2078_v58, %v390_v48  ;;  %v416_v57 = vadd.f32 %v2103_v3, %v391_v49  ;;  %v417_v59 = vadd.f32 %v2138_v28, %v392_v51  ;;  %v418_v60 = vadd.f32 %v2089_v62, %v393_v52  ;;  %v2238_v1 = vpop.permute.xlu2 %683  ;;  %v341_v62 = vld [vmem:[%s2622_s2 + $0x1c8] sm:$0xff]  ;;  %v330_v49 = vld [vmem:[%s2622_s2 + $0x170] sm:$0xff] }
  0xd6   : > { %v419_v50 = vadd.f32 %v2153_v34, %v394_v53  ;;  %v327_v34 = vld [vmem:[%s2622_s2 + $0x158] sm:$0xff] }
  0xd7   : > { %v2241_v4 = vadd.f32 %v415_v56, %v1946_v21  ;;  %v2244_v11 = vadd.f32 %v416_v57, %v1948_v22  ;;  %v2247_v58 = vadd.f32 %v417_v59, %v1929_v15  ;;  %v2250_v3 = vadd.f32 %v418_v60, %v1931_v16 }
  0xd8   : > { %v2256_v28 = vadd.f32 %v419_v50, %v1925_v12 }
  0xd9   : > { %v445_v13 = vmul.f32 %v2110_v10, %v2241_v4  ;;  %v446_v14 = vmul.f32 %v2121_v20, %v2244_v11  ;;  %v447_v17 = vmul.f32 %v2170_v42, %v2247_v58  ;;  %v448_v24 = vmul.f32 %v2123_v23, %v2250_v3  ;;  %v848_v40 = vpop.f32.mrf.mxu0 }
  0xda   : > { %v449_v26 = vmul.f32 %v2189_v61, %v2256_v28  ;;  %1337 = vperm.xlu0 %1731, %v341_v62   ;;  %1037 = vperm.xlu1 %1734, %v327_v34   ;;  %v849_v44 = vadd.f32 %v848_v40, %v559_v38  ;;  %v344_v61 = vld [vmem:[%s2622_s2 + $0x1e0] sm:$0xff] }
  0xdb   : > { %v450_v31 = vadd.f32 %v446_v14, %v445_v13  ;;  %1042 = vperm.xlu2 %1733, %v328_v25  }
  0xdc   : > { %v2274_v10 = vpop.permute.xlu0 %673  ;;  %v2276_v20 = vpop.f32.mrf.mxu3  ;;  %v453_v46 = vsel %vm381_vm3, %v449_v26, 0.0  ;;  %v921_v34 = vmax.f32 %v849_v44, 0.0 }
  0xdd   : > { %v451_v35 = vadd.f32 %v450_v31, %v447_v17  ;;  %v544_v42 = vpop.permute.xlu1 %543  ;;  %v2279_v23 = vpop.permute.xlu2 %608  ;;  %v1814_v17 = vmov 4  }
  0xde   : > { %v842_v39 = vadd.f32 %v2194_v8, %v544_v42  ;;  %v331_v8 = vld [vmem:[%s2622_s2 + $0x178] sm:$0xff] }
  0xdf   : > { %v452_v43 = vadd.f32 %v451_v35, %v448_v24 }
  0xe0   : > { %v918_v48 = vmax.f32 %v842_v39, 0.0 }
  0xe1   : > { %v454_v51 = vadd.f32 %v453_v46, %v452_v43  ;;  %v851_v50 = vpop.f32.mrf.mxu0 }
  0xe2   : > { %1352 = vperm.xlu0 %1731, %v344_v61   ;;  %v2291_v52 = vpack.c.bf16 %v919_v47, %v918_v48  ;;  %1052 = vperm.xlu1 %1734, %v330_v49   ;;  %v852_v26 = vadd.f32 %v851_v50, %v2207_v32 }
  0xe3   : > { %v455_v38 = vrot.slane %v454_v51, 4  ;;  %1057 = vperm.xlu2 %1733, %v331_v8  }
  0xe4   : > { %v2293_v53 = vpop.permute.xlu0 %598  ;;  %v2295_v56 = vpop.f32.mrf.mxu3  ;;  %v922_v61 = vmax.f32 %v852_v26, 0.0 }
  0xe5   : > { %v456_v41 = vadd.f32 %v455_v38, %v454_v51  ;;  %v554_v57 = vpop.permute.xlu1 %553  ;;  %v2297_v60 = vpop.permute.xlu2 %593 }
  0xe6   : > { %v847_v59 = vadd.f32 %v846_v2, %v554_v57 }
  0xe7   : > { %v457_v62 = vrot.slane %v456_v41, 2 }
  0xe8   : > { %v920_v13 = vmax.f32 %v847_v59, 0.0 }
  0xe9   : > { %v458_v14 = vadd.f32 %v457_v62, %v456_v41  ;;  %v853_v40 = vpop.f32.mrf.mxu0 }
  0xea   : > { %1739 = vset.pattern.permute.xlu0 %v1814_v17  ;;  %v2299_v24 = vpack.c.bf16 %v921_v34, %v920_v13  ;;  %1735 = vset.pattern.permute.xlu1 %v1814_v17 }
  0xeb   : > { %v459_v25 = vrot.slane %v458_v14, 1  ;;  %1255 = vperm.xlu0 %1739, %v1941_v19   ;;  %1736 = vset.pattern.permute.xlu2 %v1814_v17 }
  0xec   : > { %1259 = vperm.xlu1 %1735, %v1914_v7   ;;  %v2304_v2 = vpop.permute.xlu0 %583  ;;  %v2306_v31 = vpop.f32.mrf.mxu3  ;;  %1263 = vperm.xlu2 %1736, %v1909_v6  }
  0xed   : > { %v460_v35 = vadd.f32 %v459_v25, %v458_v14  ;;  %v569_v42 = vpop.permute.xlu1 %568  ;;  %v2309_v39 = vpop.permute.xlu2 %668 }
  0xee   : > { %v854_v44 = vadd.f32 %v853_v40, %v569_v42 }
  0xef   : > { %v463_v43 = vmul.f32 %v460_v35, %v1929_v15  ;;  %v465_v19 = vmul.f32 %v460_v35, %v1925_v12  ;;  %v461_v32 = vmul.f32 %v460_v35, %v1946_v21  ;;  %v462_v7 = vmul.f32 %v460_v35, %v1948_v22 }
  0xf0   : > { %v464_v46 = vmul.f32 %v460_v35, %v1931_v16  ;;  %v923_v48 = vmax.f32 %v854_v44, 0.0 }
  0xf1   : > { %v488_v47 = vadd.f32 %v2211_v37, %v463_v43  ;;  %v490_v6 = vadd.f32 %v2235_v63, %v465_v19  ;;  %v486_v49 = vadd.f32 %v2142_v30, %v461_v32  ;;  %v487_v51 = vadd.f32 %v2140_v29, %v462_v7 }
  0xf2   : > { %v489_v15 = vadd.f32 %v2155_v36, %v464_v46  ;;  %v2322_v12 = vpack.c.bf16 %v923_v48, %v922_v61 }
  0xf3   : > { %1271 = vperm.xlu0 %1739, %v1904_v5   ;;  %v2325_v21 = vadd.f32 %v488_v47, %v2247_v58  ;;  %v2328_v16 = vadd.f32 %v486_v49, %v2241_v4  ;;  %v2331_v22 = vadd.f32 %v490_v6, %v2256_v28  ;;  %v2335_v29 = vadd.f32 %v487_v51, %v2244_v11  ;;  %v2341_v58 = vpop.f32.mrf.mxu0 }
  0xf4   : > { %1267 = vperm.xlu1 %1735, %v1936_v18   ;;  %v659_v30 = vpop.permute.xlu0 %658  ;;  %v898_v37 = vpop.f32.mrf.mxu3  ;;  %v2338_v5 = vadd.f32 %v489_v15, %v2250_v3  ;;  %1737 = vset.pattern.permute.xlu2 %v1810_v9 }
  0xf5   : > { %v604_v36 = vpop.permute.xlu1 %603  ;;  %v654_v63 = vpop.permute.xlu2 %653 }
  0xfb   : > { %1740 = vset.pattern.permute.xlu0 %v1810_v9  ;;  %v2347_v11 = vpop.f32.mrf.mxu0 }
  0xfc   : > { %v644_v4 = vpop.permute.xlu0 %643  ;;  %v901_v28 = vpop.f32.mrf.mxu3  ;;  %1738 = vset.pattern.permute.xlu1 %v1810_v9 }
  0xfd   : > { %v679_v18 = vpop.permute.xlu1 %678  ;;  %v2345_v8 = vpop.permute.xlu2 %578  ;;  %v892_v19 = vadd.f32 %v2276_v20, %v644_v4 }
  0xff   : > { %v938_v46 = vmax.f32 %v892_v19, 0.0 }
 0x103   : > { %v2350_v50 = vpop.f32.mrf.mxu0 }
 0x104   : > { %v639_v38 = vpop.permute.xlu0 %638  ;;  %v903_v3 = vpop.f32.mrf.mxu3 }
 0x105   : > { %v889_v41 = vadd.f32 %v2229_v55, %v639_v38  ;;  %v664_v57 = vpop.permute.xlu1 %663  ;;  %v634_v59 = vpop.permute.xlu2 %633 }
 0x106   : > { %v887_v34 = vadd.f32 %v2209_v33, %v634_v59 }
 0x107   : > { %v937_v62 = vmax.f32 %v889_v41, 0.0 }
 0x108   : > { %v936_v13 = vmax.f32 %v887_v34, 0.0  ;;  %v904_v34 = vadd.f32 %v903_v3, %v2309_v39 }
 0x10a   : > { %v2353_v14 = vpack.c.bf16 %v937_v62, %v936_v13  ;;  %v902_v13 = vadd.f32 %v901_v28, %v664_v57 }
 0x10b   : > { %v863_v26 = vpop.f32.mrf.mxu0 }
 0x10c   : > { %v2355_v9 = vpop.permute.xlu0 %613  ;;  %v906_v17 = vpop.f32.mrf.mxu3 }
 0x10d   : > { %v589_v25 = vpop.permute.xlu1 %588  ;;  %v2359_v43 = vpop.permute.xlu2 %628  ;;  %v907_v59 = vadd.f32 %v906_v17, %v2274_v10 }
 0x113   : > { %v866_v55 = vpop.f32.mrf.mxu0 }
 0x114   : > { %v2357_v35 = vpop.permute.xlu0 %987  ;;  %v908_v42 = vpop.f32.mrf.mxu3 }
 0x115   : > { %v574_v40 = vpop.permute.xlu1 %573  ;;  %v2365_v6 = vpop.permute.xlu2 %982  ;;  %v909_v38 = vadd.f32 %v908_v42, %v679_v18  ;;  %v942_v42 = vmax.f32 %v902_v13, 0.0 }
 0x117   : > { %v945_v19 = vmax.f32 %v909_v38, 0.0 }
 0x11b   : > { %v868_v7 = vpop.f32.mrf.mxu0 }
 0x11c   : > { %v2362_v44 = vpop.permute.xlu0 %1002  ;;  %v911_v33 = vpop.f32.mrf.mxu3  ;;  %v869_v39 = vadd.f32 %v868_v7, %v2293_v53 }
 0x11d   : > { %v649_v32 = vpop.permute.xlu1 %648  ;;  %v912_v49 = vadd.f32 %v911_v33, %v2238_v1  ;;  %v899_v1 = vadd.f32 %v898_v37, %v659_v30  ;;  %v897_v33 = vadd.f32 %v2306_v31, %v654_v63  ;;  %v867_v30 = vadd.f32 %v866_v55, %v2297_v60 }
 0x11e   : > { %v894_v61 = vadd.f32 %v2295_v56, %v649_v32  ;;  %v929_v38 = vmax.f32 %v869_v39, 0.0  ;;  %v1575_v39 = vld [vmem:[%s2624_s4] sm:$0xf] }
 0x11f   : > { %v946_v62 = vmax.f32 %v912_v49, 0.0  ;;  %v941_v3 = vmax.f32 %v899_v1, 0.0  ;;  %v940_v57 = vmax.f32 %v897_v33, 0.0  ;;  %v928_v53 = vmax.f32 %v867_v30, 0.0  ;;  %v1655_v33 = vld [vmem:[%s2624_s4 + $0x4] sm:$0xf] }
 0x120   : > { %v939_v47 = vmax.f32 %v894_v61, 0.0  ;;  %v944_v61 = vmax.f32 %v907_v59, 0.0 }
 0x122   : > { %v975_v48 = vpack.c.bf16 %v939_v47, %v938_v46  ;;  %v2374_v46 = vpop.permute.xlu2 %997  ;;  %v978_v17 = vpack.c.bf16 %v945_v19, %v944_v61 }
 0x123   : > { %v871_v41 = vpop.f32.mrf.mxu0 }
 0x124   : > { %v2368_v51 = vpop.permute.xlu0 %1017  ;;  %v913_v15 = vpop.f32.mrf.mxu3  ;;  %v872_v47 = vadd.f32 %v871_v41, %v604_v36  ;;  %v862_v41 = vadd.f32 %v2350_v50, %v2304_v2  ;;  %v884_v2 = vadd.f32 %v2192_v0, %v2359_v43 }
 0x125   : > { %v914_v20 = vadd.f32 %v913_v15, %v2227_v54  ;;  %v624_v4 = vpop.permute.xlu1 %623  ;;  %v943_v54 = vmax.f32 %v904_v34, 0.0  ;;  %v864_v15 = vadd.f32 %v863_v26, %v589_v25  ;;  %v970_v25 = vpack.c.bf16 %v929_v38, %v928_v53  ;;  %v1658_v38 = vld [vmem:[%s2624_s4 + $0x14] sm:$0xf0] }
 0x126   : > { %v930_v31 = vmax.f32 %v872_v47, 0.0  ;;  %v859_v26 = vadd.f32 %v2347_v11, %v2345_v8  ;;  %v882_v34 = vadd.f32 %v2173_v45, %v624_v4  ;;  %v935_v1 = vmax.f32 %v884_v2, 0.0 }
 0x127   : > { %v947_v56 = vmax.f32 %v914_v20, 0.0  ;;  %v977_v63 = vpack.c.bf16 %v943_v54, %v942_v42  ;;  %v927_v55 = vmax.f32 %v864_v15, 0.0  ;;  %v1577_v54 = vld [vmem:[%s2624_s4 + $0x8] sm:$0xf0]  ;;  %v1583_v15 = vld [vmem:[%s2624_s4 + $0x10] sm:$0xf] }
 0x128   : > { %v934_v61 = vmax.f32 %v882_v34, 0.0  ;;  %v1580_v47 = vor.u32 %v1655_v33, %v1577_v54  ;;  %v1663_v54 = vld [vmem:[%s2624_s4 + $0x44] sm:$0xf] }
 0x129   : > { %v979_v32 = vpack.c.bf16 %v947_v56, %v946_v62  ;;  %v857_v62 = vadd.f32 %v2341_v58, %v574_v40  ;;  %v926_v56 = vmax.f32 %v862_v41, 0.0 }
 0x12a   : > { %v2387_v59 = vpop.permute.xlu2 %1012  ;;  %v973_v43 = vpack.c.bf16 %v935_v1, %v934_v61  ;;  %v1660_v1 = vld [vmem:[%s2624_s4 + $0x24] sm:$0xf0] }
 0x12b   : > { %1189 = vmatpush.bf16.msra.mxu2 %v979_v32  ;;  %v873_v49 = vpop.f32.mrf.mxu0  ;;  %v924_v50 = vmax.f32 %v857_v62, 0.0  ;;  %v969_v13 = vpack.c.bf16 %v927_v55, %v926_v56  ;;  %v925_v32 = vmax.f32 %v859_v26, 0.0  ;;  %v1659_v26 = vld [vmem:[%s2624_s4 + $0x24] sm:$0xf]  ;;  %v1593_v56 = vld [vmem:[%s2624_s4 + $0x28] sm:$0xf0] }
 0x12c   : > { %v2376_v18 = vpop.permute.xlu0 %1032  ;;  %v874_v28 = vadd.f32 %v873_v49, %v2279_v23  ;;  %v976_v23 = vpack.c.bf16 %v941_v3, %v940_v57  ;;  %v1585_v3 = vld [vmem:[%s2624_s4 + $0x18] sm:$0xf0]  ;;  %v1596_v2 = vor.u32 %v1659_v26, %v1593_v56  ;;  %v1623_v26 = vld [vmem:[%s2624_s4 + $0x60] sm:$0xf]  ;;  %v1668_v56 = vld [vmem:[%s2624_s4 + $0x64] sm:$0xf0] }
 0x12d   : > { %v619_v10 = vpop.permute.xlu1 %618  ;;  %v968_v45 = vpack.c.bf16 %v925_v32, %v924_v50 }
 0x12e   : > { %v931_v37 = vmax.f32 %v874_v28, 0.0 }
 0x12f   : > { %1190 = vmatpush.bf16.msra.mxu2 %v978_v17 }
 0x130   : > { %v971_v20 = vpack.c.bf16 %v931_v37, %v930_v31  ;;  %v334_v31 = vld [vmem:[%s2622_s2 + $0x190] sm:$0xff]  ;;  %v332_v37 = vld [vmem:[%s2622_s2 + $0x180] sm:$0xff] }
 0x131   : > { %1302 = vperm.xlu1 %1738, %v334_v31   ;;  %1292 = vperm.xlu2 %1737, %v332_v37   ;;  %v1617_v37 = vld [vmem:[%s2624_s4 + $0x58] sm:$0xf0] }
 0x132   : > { %1140 = vmatpush.bf16.msra.mxu1 %v971_v20  ;;  %v2401_v4 = vpop.permute.xlu2 %1027 }
 0x133   : > { %1191 = vmatpush.bf16.msra.mxu2 %v977_v63  ;;  %v876_v60 = vpop.f32.mrf.mxu0 }
 0x134   : > { %v2381_v36 = vpop.permute.xlu0 %1047  ;;  %v877_v8 = vadd.f32 %v876_v60, %v2355_v9  ;;  %v1584_v60 = vor.u32 %v1658_v38, %v1583_v15  ;;  %v340_v38 = vld [vmem:[%s2622_s2 + $0x1c0] sm:$0xff] }
 0x135   : > { %v2385_v7 = vpop.permute.xlu1 %992 }
 0x136   : > { %1141 = vmatpush.bf16.msra.mxu1 %v970_v25 }
 0x137   : > { %1192 = vmatpush.bf16.msra.mxu2 %v976_v23 }
 0x13a   : > { %1142 = vmatpush.bf16.msra.mxu1 %v969_v13 }
 0x13b   : > { %1193 = vmatpush.bf16.msra.mxu2 %v975_v48  ;;  %v878_v40 = vpop.f32.mrf.mxu0  ;;  %v932_v48 = vmax.f32 %v877_v8, 0.0 }
 0x13c   : > { %v2395_v19 = vpop.permute.xlu0 %1297  ;;  %v879_v11 = vadd.f32 %v878_v40, %v619_v10  ;;  %v2415_v10 = vpop.permute.xlu2 %1042  ;;  %v1591_v40 = vld [vmem:[%s2624_s4 + $0x20] sm:$0xf] }
 0x13d   : > { %v2397_v58 = vpop.permute.xlu1 %1007  ;;  %v1592_v8 = vor.u32 %v1660_v1, %v1591_v40 }
 0x13e   : > { %v933_v0 = vmax.f32 %v879_v11, 0.0  ;;  %1143 = vmatpush.bf16.msra.mxu1 %v968_v45  ;;  %v335_v11 = vld [vmem:[%s2622_s2 + $0x198] sm:$0xff] }
 0x13f   : > { %1194 = vmatpush.bf16.msra.mxu2 %v2353_v14  ;;  %1307 = vperm.xlu2 %1737, %v335_v11  }
 0x140   : > { %v972_v14 = vpack.c.bf16 %v933_v0, %v932_v48  ;;  %v339_v0 = vld [vmem:[%s2622_s2 + $0x1b8] sm:$0xff] }
 0x141   : > { %v1662_v48 = vld [vmem:[%s2624_s4 + $0x34] sm:$0xf0] }
 0x142   : > { %1144 = vmatpush.bf16.msra.mxu1 %v2322_v12  ;;  %v1656_v12 = vld [vmem:[%s2624_s4 + $0x4] sm:$0xf0] }
 0x143   : > { %1195 = vmatpush.bf16.msra.mxu2 %v973_v43  ;;  %v1576_v28 = vor.u32 %v1656_v12, %v1575_v39  ;;  %v1599_v43 = vld [vmem:[%s2624_s4 + $0x30] sm:$0xf]  ;;  %v337_v39 = vld [vmem:[%s2622_s2 + $0x1a8] sm:$0xff] }
 0x144   : > { %v2409_v9 = vpop.permute.xlu0 %1322  ;;  %v1600_v33 = vor.u32 %v1662_v48, %v1599_v43 }
 0x145   : > { %v2411_v42 = vpop.permute.xlu1 %1022 }
 0x146   : > { %1145 = vmatpush.bf16.msra.mxu1 %v2299_v24  ;;  %v1657_v24 = vld [vmem:[%s2624_s4 + $0x14] sm:$0xf] }
 0x147   : > { %1196 = vmatpush.bf16.msra.mxu2 %v972_v14  ;;  %v1609_v14 = vld [vmem:[%s2624_s4 + $0x48] sm:$0xf0]  ;;  %1317 = vperm.xlu2 %1737, %v337_v39  }
 0x148   : > { %v1612_v12 = vor.u32 %v1663_v54, %v1609_v14 }
 0x14a   : > { %1197 = vmatmul.bf16.vlgmr.msra.gmra.mxu2 %v1580_v47  ;;  %1146 = vmatpush.bf16.msra.mxu1 %v2291_v52  ;;  %v2435_v52 = vpop.permute.xlu2 %1057  ;;  %v342_v47 = vld [vmem:[%s2622_s2 + $0x1d0] sm:$0xff] }
 0x14c   : > { %v2417_v17 = vpop.permute.xlu0 %1337 }
 0x14d   : > { %v2419_v49 = vpop.permute.xlu1 %1037 }
 0x14e   : > { %1147 = vmatpush.bf16.msra.mxu1 %v2205_v27  ;;  %v1588_v27 = vor.u32 %v1657_v24, %v1585_v3  ;;  %v1607_v24 = vld [vmem:[%s2624_s4 + $0x40] sm:$0xf]  ;;  %v1664_v3 = vld [vmem:[%s2624_s4 + $0x44] sm:$0xf0] }
 0x14f   : > { %v1608_v31 = vor.u32 %v1664_v3, %v1607_v24  ;;  %1332 = vperm.xlu2 %1737, %v340_v38  }
 0x151   : > { %1148 = vmatmul.bf16.vlgmr.msra.gmra.mxu1 %v1576_v28  ;;  %v345_v28 = vld [vmem:[%s2622_s2 + $0x1e8] sm:$0xff] }
 0x152   : > { %v1264_v20 = vpop.permute.xlu2 %1263 }
 0x153   : > { %v1276_v55 = vmul.f32 %v1264_v20, %v2325_v21  ;;  %v1615_v20 = vld [vmem:[%s2624_s4 + $0x50] sm:$0xf] }
 0x154   : > { %v2437_v57 = vpop.permute.xlu0 %1352 }
 0x155   : > { %v2439_v30 = vpop.permute.xlu1 %1052 }
 0x15a   : > { %1202 = vmatmul.bf16.gmra.mxu2 %v1588_v27  ;;  %v1665_v27 = vld [vmem:[%s2624_s4 + $0x54] sm:$0xf] }
 0x15b   : > { %v1620_v15 = vor.u32 %v1665_v27, %v1617_v37 }
 0x15d   : > { %v1256_v63 = vpop.permute.xlu0 %1255 }
 0x15e   : > { %v1274_v41 = vmul.f32 %v1256_v63, %v2328_v16  ;;  %v1260_v53 = vpop.permute.xlu1 %1259  ;;  %v336_v16 = vld [vmem:[%s2622_s2 + $0x1a0] sm:$0xff]  ;;  %v347_v63 = vld [vmem:[%s2622_s2 + $0x1f8] sm:$0xff] }
 0x15f   : > { %v1275_v23 = vmul.f32 %v1260_v53, %v2335_v29  ;;  %1312 = vperm.xlu1 %1738, %v336_v16   ;;  %v1624_v16 = vor.u32 %v1668_v56, %v1623_v26 }
 0x161   : > { %v1279_v62 = vadd.f32 %v1275_v23, %v1274_v41  ;;  %1153 = vmatmul.bf16.gmra.mxu1 %v1584_v60  ;;  %v1666_v41 = vld [vmem:[%s2624_s4 + $0x54] sm:$0xf0]  ;;  %v1667_v60 = vld [vmem:[%s2624_s4 + $0x64] sm:$0xf] }
 0x162   : > { %v1616_v53 = vor.u32 %v1666_v41, %v1615_v20  ;;  %v343_v23 = vld [vmem:[%s2622_s2 + $0x1d8] sm:$0xff] }
 0x163   : > { %v1280_v25 = vadd.f32 %v1279_v62, %v1276_v55  ;;  %v1625_v55 = vld [vmem:[%s2624_s4 + $0x68] sm:$0xf0]  ;;  %1347 = vperm.xlu2 %1737, %v343_v23  }
 0x164   : > { %v1628_v62 = vor.u32 %v1667_v60, %v1625_v55 }
 0x165   : > { %v1272_v34 = vpop.permute.xlu0 %1271 }
 0x166   : > { %v1278_v29 = vmul.f32 %v1272_v34, %v2331_v22  ;;  %v1268_v21 = vpop.permute.xlu1 %1267  ;;  %v1661_v22 = vld [vmem:[%s2624_s4 + $0x34] sm:$0xf] }
 0x167   : > { %v1277_v50 = vmul.f32 %v1268_v21, %v2338_v5  ;;  %v1601_v5 = vld [vmem:[%s2624_s4 + $0x38] sm:$0xf0]  ;;  %1327 = vperm.xlu1 %1738, %v339_v0   ;;  %v1669_v34 = vld [vmem:[%s2624_s4 + $0x74] sm:$0xf] }
 0x168   : > { %v1282_v32 = vsel %vm381_vm3, %v1278_v29, 0.0  ;;  %v1604_v45 = vor.u32 %v1661_v22, %v1601_v5  ;;  %v1633_v29 = vld [vmem:[%s2624_s4 + $0x78] sm:$0xf0] }
 0x169   : > { %v1281_v13 = vadd.f32 %v1280_v25, %v1277_v50  ;;  %v346_v25 = vld [vmem:[%s2622_s2 + $0x1f0] sm:$0xff]  ;;  %v1636_v21 = vor.u32 %v1669_v34, %v1633_v29  ;;  %v1670_v50 = vld [vmem:[%s2624_s4 + $0x74] sm:$0xf0] }
 0x16a   : > { %1207 = vmatmul.bf16.gmra.mxu2 %v1596_v2  ;;  %v1631_v2 = vld [vmem:[%s2624_s4 + $0x70] sm:$0xf] }
 0x16b   : > { %v2468_v61 = vadd.f32 %v1282_v32, %v1281_v13  ;;  %1362 = vperm.xlu2 %1737, %v346_v25   ;;  %v1632_v13 = vor.u32 %v1670_v50, %v1631_v2 }
 0x16f   : > { %1342 = vperm.xlu1 %1738, %v342_v47  }
 0x171   : > { %1158 = vmatmul.bf16.gmra.mxu1 %v1592_v8 }
 0x177   : > { %1357 = vperm.xlu1 %1738, %v345_v28  }
 0x17a   : > { %1212 = vmatmul.bf16.gmra.mxu2 %v1604_v45 }
 0x17f   : > { %1367 = vperm.xlu1 %1738, %v347_v63  }
 0x181   : > { %1163 = vmatmul.bf16.gmra.mxu1 %v1600_v33 }
 0x18a   : > { %1217 = vmatmul.bf16.gmra.mxu2 %v1612_v12 }
 0x18b   : > { %v1293_v43 = vpop.permute.xlu2 %1292 }
 0x191   : > { %1168 = vmatmul.bf16.gmra.mxu1 %v1608_v31 }
 0x199   : > { %v1308_v38 = vpop.permute.xlu2 %1307 }
 0x19a   : > { %1222 = vmatmul.bf16.gmra.mxu2 %v1620_v15 }
 0x1a1   : > { %1173 = vmatmul.bf16.gmra.mxu1 %v1616_v53 }
 0x1aa   : > { %1227 = vmatmul.bf16.gmra.mxu2 %v1628_v62 }
 0x1b1   : > { %1178 = vmatmul.bf16.gmra.mxu1 %v1624_v16 }
 0x1ba   : > { %1232 = vmatmul.bf16.gmra.mxu2 %v1636_v21 }
 0x1c1   : > { %1183 = vmatmul.bf16.gmra.mxu1 %v1632_v13 }
 0x1cd   : > { %v1198_v32 = vpop.f32.mrf.mxu2 }
 0x1ce   : > { %v1149_v40 = vpop.f32.mrf.mxu1 }
 0x1cf   : > { %v1150_v1 = vadd.f32 %v1149_v40, %v2365_v6  ;;  %v1303_v6 = vpop.permute.xlu1 %1302 }
 0x1d1   : > { %v1199_v8 = vadd.f32 %v1198_v32, %v1150_v1 }
 0x1d3   : > { %v1238_v45 = vmax.f32 %v1199_v8, 0.0 }
 0x1d5   : > { %v1200_v22 = vpop.f32.mrf.mxu2  ;;  %v1370_v54 = vmul.f32 %v1293_v43, %v1238_v45 }
 0x1d6   : > { %v1151_v5 = vpop.f32.mrf.mxu1 }
 0x1d7   : > { %v1152_v11 = vadd.f32 %v1151_v5, %v2357_v35  ;;  %v1313_v55 = vpop.permute.xlu1 %1312  ;;  %v1318_v5 = vpop.permute.xlu2 %1317 }
 0x1d9   : > { %v1201_v0 = vadd.f32 %v1200_v22, %v1152_v11 }
 0x1db   : > { %v1239_v33 = vmax.f32 %v1201_v0, 0.0 }
 0x1dd   : > { %v1203_v48 = vpop.f32.mrf.mxu2  ;;  %v1371_v14 = vmul.f32 %v2395_v19, %v1239_v33 }
 0x1de   : > { %v1154_v47 = vpop.f32.mrf.mxu1 }
 0x1df   : > { %v1155_v39 = vadd.f32 %v1154_v47, %v2385_v7  ;;  %v1386_v12 = vadd.f32 %v1371_v14, %v1370_v54  ;;  %v1328_v43 = vpop.permute.xlu1 %1327 }
 0x1e1   : > { %v1204_v28 = vadd.f32 %v1203_v48, %v1155_v39  ;;  %v1333_v39 = vpop.permute.xlu2 %1332 }
 0x1e3   : > { %v1240_v3 = vmax.f32 %v1204_v28, 0.0 }
 0x1e5   : > { %v1205_v24 = vpop.f32.mrf.mxu2  ;;  %v1372_v31 = vmul.f32 %v1303_v6, %v1240_v3 }
 0x1e6   : > { %v1156_v27 = vpop.f32.mrf.mxu1 }
 0x1e7   : > { %v1387_v37 = vadd.f32 %v1386_v12, %v1372_v31  ;;  %v1157_v35 = vadd.f32 %v1156_v27, %v2374_v46 }
 0x1e9   : > { %v1206_v63 = vadd.f32 %v1205_v24, %v1157_v35  ;;  %v1343_v35 = vpop.permute.xlu1 %1342 }
 0x1eb   : > { %v1241_v20 = vmax.f32 %v1206_v63, 0.0 }
 0x1ed   : > { %v1208_v15 = vpop.f32.mrf.mxu2  ;;  %v1373_v41 = vmul.f32 %v1308_v38, %v1241_v20 }
 0x1ee   : > { %v1159_v53 = vpop.f32.mrf.mxu1 }
 0x1ef   : > { %v1388_v19 = vadd.f32 %v1387_v37, %v1373_v41  ;;  %v1160_v23 = vadd.f32 %v1159_v53, %v2362_v44 }
 0x1f1   : > { %v1209_v7 = vadd.f32 %v1208_v15, %v1160_v23  ;;  %v1348_v23 = vpop.permute.xlu2 %1347 }
 0x1f3   : > { %v1242_v62 = vmax.f32 %v1209_v7, 0.0 }
 0x1f5   : > { %v1210_v60 = vpop.f32.mrf.mxu2  ;;  %v1374_v25 = vmul.f32 %v1313_v55, %v1242_v62 }
 0x1f6   : > { %v1161_v26 = vpop.f32.mrf.mxu1 }
 0x1f7   : > { %v1389_v56 = vadd.f32 %v1388_v19, %v1374_v25  ;;  %v1162_v44 = vadd.f32 %v1161_v26, %v2397_v58 }
 0x1f9   : > { %v1211_v45 = vadd.f32 %v1210_v60, %v1162_v44 }
 0x1fb   : > { %v1243_v14 = vmax.f32 %v1211_v45, 0.0 }
 0x1fd   : > { %v1213_v16 = vpop.f32.mrf.mxu2  ;;  %v1375_v3 = vmul.f32 %v1318_v5, %v1243_v14 }
 0x1fe   : > { %v1164_v34 = vpop.f32.mrf.mxu1 }
 0x1ff   : > { %v1165_v11 = vadd.f32 %v1164_v34, %v2387_v59  ;;  %v1390_v38 = vadd.f32 %v1389_v56, %v1375_v3 }
 0x201   : > { %v1214_v33 = vadd.f32 %v1213_v16, %v1165_v11 }
 0x203   : > { %v1244_v28 = vmax.f32 %v1214_v33, 0.0 }
 0x205   : > { %v1215_v29 = vpop.f32.mrf.mxu2  ;;  %v1376_v37 = vmul.f32 %v2409_v9, %v1244_v28 }
 0x206   : > { %v1166_v46 = vpop.f32.mrf.mxu1 }
 0x207   : > { %v1167_v0 = vadd.f32 %v1166_v46, %v2368_v51  ;;  %v1358_v46 = vpop.permute.xlu1 %1357 }
 0x209   : > { %v1216_v47 = vadd.f32 %v1215_v29, %v1167_v0 }
 0x20b   : > { %v1245_v59 = vmax.f32 %v1216_v47, 0.0 }
 0x20d   : > { %v1218_v21 = vpop.f32.mrf.mxu2 }
 0x20e   : > { %v1169_v2 = vpop.f32.mrf.mxu1 }
 0x20f   : > { %v1170_v54 = vadd.f32 %v1169_v2, %v2411_v42  ;;  %v1368_v33 = vpop.permute.xlu1 %1367 }
 0x211   : > { %v1219_v58 = vadd.f32 %v1218_v21, %v1170_v54 }
 0x213   : > { %v1246_v42 = vmax.f32 %v1219_v58, 0.0 }
 0x215   : > { %v1220_v50 = vpop.f32.mrf.mxu2  ;;  %v1378_v19 = vmul.f32 %v1333_v39, %v1246_v42 }
 0x216   : > { %v1171_v13 = vpop.f32.mrf.mxu1 }
 0x217   : > { %v1172_v12 = vadd.f32 %v1171_v13, %v2401_v4  ;;  %v1377_v4 = vmul.f32 %v1328_v43, %v1245_v59 }
 0x219   : > { %v1221_v27 = vadd.f32 %v1220_v50, %v1172_v12 }
 0x21b   : > { %v1247_v20 = vmax.f32 %v1221_v27, 0.0 }
 0x21d   : > { %v1223_v32 = vpop.f32.mrf.mxu2  ;;  %v1379_v9 = vmul.f32 %v2417_v17, %v1247_v20 }
 0x21e   : > { %v1174_v40 = vpop.f32.mrf.mxu1 }
 0x21f   : > { %v1175_v6 = vadd.f32 %v1174_v40, %v2376_v18  ;;  %v1391_v18 = vadd.f32 %v1390_v38, %v1376_v37 }
 0x221   : > { %v1224_v63 = vadd.f32 %v1223_v32, %v1175_v6  ;;  %v1392_v55 = vadd.f32 %v1391_v18, %v1377_v4 }
 0x223   : > { %v1248_v7 = vmax.f32 %v1224_v63, 0.0  ;;  %v1393_v56 = vadd.f32 %v1392_v55, %v1378_v19 }
 0x225   : > { %v1225_v1 = vpop.f32.mrf.mxu2  ;;  %v1380_v16 = vmul.f32 %v1343_v35, %v1248_v7 }
 0x226   : > { %v1176_v8 = vpop.f32.mrf.mxu1 }
 0x227   : > { %v1177_v51 = vadd.f32 %v1176_v8, %v2419_v49 }
 0x229   : > { %v1226_v41 = vadd.f32 %v1225_v1, %v1177_v51  ;;  %v1284_v1 = vrot.slane %v2468_v61, 4 }
 0x22b   : > { %v1249_v25 = vmax.f32 %v1226_v41, 0.0  ;;  %v1285_v0 = vadd.f32 %v1284_v1, %v2468_v61 }
 0x22d   : > { %v1228_v22 = vpop.f32.mrf.mxu2  ;;  %v1381_v21 = vmul.f32 %v1348_v23, %v1249_v25  ;;  %v1286_v14 = vrot.slane %v1285_v0, 2 }
 0x22e   : > { %v1179_v48 = vpop.f32.mrf.mxu1 }
 0x22f   : > { %v1180_v15 = vadd.f32 %v1179_v48, %v2415_v10  ;;  %v1287_v12 = vadd.f32 %v1286_v14, %v1285_v0 }
 0x231   : > { %v1229_v60 = vadd.f32 %v1228_v22, %v1180_v15 }
 0x233   : > { %v1250_v34 = vmax.f32 %v1229_v60, 0.0 }
 0x235   : > { %v1230_v24 = vpop.f32.mrf.mxu2  ;;  %v1382_v13 = vmul.f32 %v2437_v57, %v1250_v34 }
 0x236   : > { %v1181_v31 = vpop.f32.mrf.mxu1 }
 0x237   : > { %v1182_v53 = vadd.f32 %v1181_v31, %v2381_v36  ;;  %v1394_v36 = vadd.f32 %v1393_v56, %v1379_v9 }
 0x239   : > { %v1231_v26 = vadd.f32 %v1230_v24, %v1182_v53  ;;  %v1395_v50 = vadd.f32 %v1394_v36, %v1380_v16  ;;  %v1288_v24 = vrot.slane %v1287_v12, 1 }
 0x23b   : > { %v1251_v2 = vmax.f32 %v1231_v26, 0.0  ;;  %v1396_v17 = vadd.f32 %v1395_v50, %v1381_v21  ;;  %v1289_v3 = vadd.f32 %v1288_v24, %v1287_v12 }
 0x23d   : > { %v1233_v49 = vpop.f32.mrf.mxu2  ;;  %v1383_v8 = vmul.f32 %v1358_v46, %v1251_v2  ;;  %v1397_v5 = vadd.f32 %v1396_v17, %v1382_v13 }
 0x23e   : > { %v1184_v62 = vpop.f32.mrf.mxu1 }
 0x23f   : > { %v1185_v10 = vadd.f32 %v1184_v62, %v2439_v30  ;;  %v1363_v30 = vpop.permute.xlu2 %1362  ;;  %v1398_v43 = vadd.f32 %v1397_v5, %v1383_v8 }
 0x241   : > { %v1234_v29 = vadd.f32 %v1233_v49, %v1185_v10 }
 0x243   : > { %v1252_v32 = vmax.f32 %v1234_v29, 0.0 }
 0x245   : > { %v1235_v22 = vpop.f32.mrf.mxu2  ;;  %v1384_v11 = vmul.f32 %v1363_v30, %v1252_v32 }
 0x246   : > { %v1186_v40 = vpop.f32.mrf.mxu1 }
 0x247   : > { %v1187_v44 = vadd.f32 %v1186_v40, %v2435_v52  ;;  %v1399_v54 = vadd.f32 %v1398_v43, %v1384_v11 }
 0x249   : > { %v1236_v45 = vadd.f32 %v1235_v22, %v1187_v44 }
 0x24b   : > { %v1253_v48 = vmax.f32 %v1236_v45, 0.0 }
 0x24d   : > { %v1385_v57 = vmul.f32 %v1368_v33, %v1253_v48 }
 0x24f   : > { %v1400_v47 = vadd.f32 %v1399_v54, %v1385_v57 }
 0x251   : > { %v1401_v39 = vrot.slane %v1400_v47, 4 }
 0x253   : > { %v1402_v28 = vadd.f32 %v1401_v39, %v1400_v47 }
 0x255   : > { %v1403_v52 = vrot.slane %v1402_v28, 2 }
 0x257   : > { %v1404_v58 = vadd.f32 %v1403_v52, %v1402_v28 }
 0x259   : > { %v1405_v6 = vrot.slane %v1404_v58, 1 }
 0x25b   : > { %v1406_v59 = vadd.f32 %v1405_v6, %v1404_v58 }
 0x25d   : > { %v1407_v61 = vadd.f32 %v1406_v59, %v1289_v3 }
 0x25f   : > { %v1408_v31 = vsub.f32 0.0, %v1407_v61 }
 0x261   : > { %v1409_v27 = vmul.f32 1.442695, %v1408_v31 }
 0x263   : > { %1741 = vpow2.f32 %v1409_v27 }
 0x269   : > { %v1742_v51 = vpop.eup %1741 }
 0x26a   : > { %v1411_v37 = vadd.f32 1.0, %v1742_v51 }
 0x26c   : > { %1743 = vrcp.f32 %v1411_v37 }
 0x272   : > { %v1744_v35 = vpop.eup %1743 }
 0x273   : > { %1413 = vst [vmem:[%s272_s11] sm:$0x1] %v1744_v35 }
 0x274   : > { %1772 = shalt.err (!%p1769_p5)
}
 0x275   : > { %1676 = dma.vmem_to_hbm [thread:$0]  (%p1883_p6), %s1426_s12, 16, %s1428_s13, %s1415_s14  }
 0x276 PF: > { %s1439_s23 = sand.u32 1, %s1795_s18   ;;  %p1679_p7 = pnand %p1490_p9, %p1887_p8 }
 0x277   : > { %s1440_s6 = scalar_lea.sflag [#allocation4], %s1439_s23 }
 0x278   : > { %p1680_p10 = pneg %p1679_p7 }
 0x27a   : > { %1790 = dma.done.wait (%p1680_p10), %s1440_s6, 16  }
 0x27b   : > { %1792 = vsyncadd (%p1680_p10), %s1440_s6, 4294967280  ;;  %p15_p11 = scmp.ge.s32.totalorder %s1868_s24, 4   ;;  %s2628_s18 = smov %s1799_s19 }
 0x27c   : > { %s2629_s19 = smov %s1803_s20  ;;  %s2630_s20 = smov %s1881_s27 }
 0x27d   : > { %s2631_s21 = smov %s1868_s24  ;;  %17 = sbr.rel (!%p15_p11) target bundleno = 3 (0x3), region = 118 }
 0x282   :  { %1445 = vsyncpa [#allocation4], 1 }
 0x283   :  { %1447 = vsyncpa [#allocation4 + $0x1], 1 }

</bundles_post_ra>
